<compile_context>
chip_gen: v6e
topology: v6e:2x2x1
jax: 0.10.0
libtpu: 0.0.40
codegen_flags: <defaults>
</compile_context>

<pallas_src>
import jax
import jax.numpy as jnp
from jax.experimental import pallas as pl
from jax.experimental.pallas import tpu as pltpu

NTYPES = ("H", "C", "Others")   # fixed node-type order: 0=H, 1=C, 2=Others


# --------------------------------------------------------------------------
# Fused Pallas kernel
# --------------------------------------------------------------------------
def _fused_hetero_gnn_kernel(
    x_ref,      # (3n, 3*in_max)  f32  block-diag raw features (by node type)
    mask_ref,   # (3n, 3d)        f32  1.0 on (valid row, own col-block), else 0
    w1_ref,     # (3*in_max, 3h)  f32  encoder Linear1, block-diag, pre-transposed
    b1_ref,     # (1, 3h)         f32
    w2_ref,     # (3h, 3d)        f32  encoder Linear2, block-diag, pre-transposed
    b2_ref,     # (1, 3d)         f32
    a_ref,      # (3n, 3n)        bf16 full heterogeneous adjacency (dst rows, src cols)
    wrel_ref,   # (L, 3d, 3d)     f32  W_rel packed: block[src, dst] = W_rel[dst,src].T
    wroot_ref,  # (L, 3d, 3d)     f32  block-diag: sum_src W_root[dst,src].T
    brel_ref,   # (L, 1, 3d)      f32  col-block dst = sum_src b_rel[dst,src]
    wpred_ref,  # (3d, 8)         f32  pred heads packed (col 0 = H, col 1 = C)
    bpred_ref,  # (1, 8)          f32
    out_ref,    # (3n, 8)         f32  single lane-denser output store
    h_ref,      # (3n, 3d)        f32  persistent VMEM node-feature buffer (scratch)
):
    num_layers = wrel_ref.shape[0]

    # ---- MLP encoders: both Linear layers as single block-diagonal matmuls ----
    z = jnp.dot(x_ref[...], w1_ref[...], preferred_element_type=jnp.float32) + b1_ref[...]
    z = jnp.maximum(z, 0.0)                                      # ReLU (Dropout = id)
    z = jnp.dot(z, w2_ref[...], preferred_element_type=jnp.float32) + b2_ref[...]
    h_ref[...] = jnp.maximum(z, 0.0) * mask_ref[...]             # ReLU + pad/off-block mask

    # ---- adjacency upcast hoisted out of the layer loop (single bf16->f32 convert) ----
    a_f32 = a_ref[...].astype(jnp.float32)

    # ---- stacked HeteroConv(GraphConv, aggr='sum') layers: 3 matmuls per layer ----
    for l in range(num_layers):
        h = h_ref[...]
        # per-relation messages for all (src, dst) pairs in one MXU pass
        y = jnp.dot(h, wrel_ref[l], preferred_element_type=jnp.float32)
        # root term for all dst types in one block-diag MXU pass
        r = jnp.dot(h, wroot_ref[l], preferred_element_type=jnp.float32)
        # heterogeneous neighborhood aggregation in one MXU pass
        acc = jnp.dot(a_f32, y, preferred_element_type=jnp.float32) + r + brel_ref[l]
        # ReLU (Dropout = id); mask kills padded rows and cross-type garbage blocks
        h_ref[...] = jnp.maximum(acc, 0.0) * mask_ref[...]

    # ---- both prediction heads in one matmul + one store ----
    out_ref[...] = (jnp.dot(h_ref[...], wpred_ref[...],
                            preferred_element_type=jnp.float32) + bpred_ref[...])


def _cost_estimate(fused_inputs):
    x_blk, mask_blk, w1, b1, w2, b2, a, wrel, wroot, brel, wpred, bpred = fused_inputs
    n3 = x_blk.shape[0]
    d3 = mask_blk.shape[1]
    L = wrel.shape[0]
    flops = 2 * n3 * x_blk.shape[1] * w1.shape[1]            # encoder L1
    flops += 2 * n3 * w1.shape[1] * w2.shape[1]              # encoder L2
    flops += L * (2 * n3 * d3 * d3 * 2 + 2 * n3 * n3 * d3)   # wrel + wroot + aggregation
    flops += 2 * n3 * d3 * wpred.shape[1]                    # pred heads
    bytes_accessed = sum(int(v.size) * v.dtype.itemsize for v in fused_inputs)
    bytes_accessed += n3 * wpred.shape[1] * 4                # output
    return pl.CostEstimate(flops=int(flops), transcendentals=0,
                           bytes_accessed=int(bytes_accessed))


def hetero_gnn_forward_fused(fused_inputs, num_nodes, n_pad):
    n3 = fused_inputs[0].shape[0]
    d3 = fused_inputs[1].shape[1]
    out = pl.pallas_call(
        _fused_hetero_gnn_kernel,
        out_shape=jax.ShapeDtypeStruct((n3, 8), jnp.float32),
        scratch_shapes=[pltpu.VMEM((n3, d3), jnp.float32)],
        compiler_params=pltpu.CompilerParams(vmem_limit_bytes=16 * 1024 * 1024),
        cost_estimate=_cost_estimate(fused_inputs),
    )(*fused_inputs)
    return {
        "H": out[: num_nodes["H"], 0:1],
        "C": out[n_pad: n_pad + num_nodes["C"], 1:2],
        "Others": None,
    }


# --------------------------------------------------------------------------
# Parameter init (PyTorch layout)
# --------------------------------------------------------------------------
def init_params(key, in_dim_dict, hidden_dim, out_dim, num_gnn_layers):
    def nrm(k, shape, scale=0.2):
        return scale * jax.random.normal(k, shape, jnp.float32)

    params = {"encoder": {}, "convs": [], "pred": {}}
    for t in NTYPES:
        key, k1, k2, k3, k4 = jax.random.split(key, 5)
        params["encoder"][t] = {
            "w1": nrm(k1, (hidden_dim, in_dim_dict[t])),
            "b1": nrm(k2, (hidden_dim,)),
            "w2": nrm(k3, (out_dim, hidden_dim)),
            "b2": nrm(k4, (out_dim,)),
        }
    for _ in range(num_gnn_layers):
        key, k1, k2, k3 = jax.random.split(key, 4)
        params["convs"].append({
            "w_rel":  nrm(k1, (3, 3, out_dim, out_dim)),   # indexed [dst_type, src_type]
            "b_rel":  nrm(k2, (3, 3, 1, out_dim)),
            "w_root": nrm(k3, (3, 3, out_dim, out_dim)),   # lin_root has no bias in GraphConv
        })
    for t in ("H", "C"):
        key, k1, k2 = jax.random.split(key, 3)
        params["pred"][t] = {"w": nrm(k1, (1, out_dim)), "b": nrm(k2, (1,))}
    return params


# --------------------------------------------------------------------------
# Host-side packing: block-diagonal / block-stacked operands for the fused kernel
# --------------------------------------------------------------------------
def build_fused_inputs(x_dict, edge_index_dict, params, num_nodes, n_pad, in_max, out_dim):
    hidden = params["encoder"]["H"]["w1"].shape[0]
    d = out_dim
    n3 = 3 * n_pad

    # block-diag node features + per-(row, col-block) validity mask
    x_blk = jnp.zeros((n3, 3 * in_max), jnp.float32)
    mask_blk = jnp.zeros((n3, 3 * d), jnp.float32)
    for ti, t in enumerate(NTYPES):
        x = x_dict[t]
        x_blk = x_blk.at[ti * n_pad: ti * n_pad + x.shape[0],
                         ti * in_max: ti * in_max + x.shape[1]].set(x)
        mask_blk = mask_blk.at[ti * n_pad: ti * n_pad + num_nodes[t],
                               ti * d:(ti + 1) * d].set(1.0)

    # encoder weights: block-diagonal, pre-transposed to (in, out)
    w1_blk = jnp.zeros((3 * in_max, 3 * hidden), jnp.float32)
    b1_cat = jnp.zeros((1, 3 * hidden), jnp.float32)
    w2_blk = jnp.zeros((3 * hidden, 3 * d), jnp.float32)
    b2_cat = jnp.zeros((1, 3 * d), jnp.float32)
    for ti, t in enumerate(NTYPES):
        p = params["encoder"][t]
        in_t = p["w1"].shape[1]
        w1_blk = w1_blk.at[ti * in_max: ti * in_max + in_t,
                           ti * hidden:(ti + 1) * hidden].set(p["w1"].T)
        b1_cat = b1_cat.at[0, ti * hidden:(ti + 1) * hidden].set(p["b1"])
        w2_blk = w2_blk.at[ti * hidden:(ti + 1) * hidden, ti * d:(ti + 1) * d].set(p["w2"].T)
        b2_cat = b2_cat.at[0, ti * d:(ti + 1) * d].set(p["b2"])

    # full heterogeneous adjacency as one (3n, 3n) block matrix; bf16 storage
    # (exact for small integer edge multiplicities)
    a_big = jnp.zeros((n3, n3), jnp.float32)
    present = set()
    for (s, _, dd), (src_idx, dst_idx) in edge_index_dict.items():
        si, di = NTYPES.index(s), NTYPES.index(dd)
        present.add((si, di))
        a_big = a_big.at[di * n_pad + dst_idx, si * n_pad + src_idx].add(1.0)
    a_big = a_big.astype(jnp.bfloat16)

    # conv weights: W_rel packed as one (3d, 3d) per layer;
    # root weights / biases summed only over relations actually PRESENT (PyG HeteroConv).
    L = len(params["convs"])
    wrel_big = jnp.zeros((L, 3 * d, 3 * d), jnp.float32)
    wroot_blk = jnp.zeros((L, 3 * d, 3 * d), jnp.float32)
    brel_cat = jnp.zeros((L, 1, 3 * d), jnp.float32)
    for l, layer in enumerate(params["convs"]):
        for di in range(3):
            for si in range(3):
                if (si, di) not in present:
                    continue
                wrel_big = wrel_big.at[l, si * d:(si + 1) * d,
                                       di * d:(di + 1) * d].set(layer["w_rel"][di, si].T)
                wroot_blk = wroot_blk.at[l, di * d:(di + 1) * d,
                                         di * d:(di + 1) * d].add(layer["w_root"][di, si].T)
                brel_cat = brel_cat.at[l, 0, di * d:(di + 1) * d].add(layer["b_rel"][di, si, 0])

    # prediction heads folded into one matmul / one store (col 0 = H, col 1 = C)
    wpred = jnp.zeros((3 * d, 8), jnp.float32)
    bpred = jnp.zeros((1, 8), jnp.float32)
    wpred = wpred.at[0 * d:1 * d, 0].set(params["pred"]["H"]["w"][0])
    wpred = wpred.at[1 * d:2 * d, 1].set(params["pred"]["C"]["w"][0])
    bpred = bpred.at[0, 0].set(params["pred"]["H"]["b"][0])
    bpred = bpred.at[0, 1].set(params["pred"]["C"]["b"][0])

    return (x_blk, mask_blk, w1_blk, b1_cat, w2_blk, b2_cat,
            a_big, wrel_big, wroot_blk, brel_cat, wpred, bpred)


# --------------------------------------------------------------------------
# Pure-JAX reference for verification (scatter-add based, unpadded).
# --------------------------------------------------------------------------
def reference_forward(x_dict, edge_index_dict, params, num_nodes, out_dim):
    h = {}
    for t in NTYPES:
        p = params["encoder"][t]
        z = jnp.maximum(x_dict[t] @ p["w1"].T + p["b1"], 0.0)
        h[t] = jnp.maximum(z @ p["w2"].T + p["b2"], 0.0)
    for layer in params["convs"]:
        new_h = {t: jnp.zeros((num_nodes[t], out_dim), jnp.float32) for t in NTYPES}
        for (s, _, d), (src_idx, dst_idx) in edge_index_dict.items():
            si, di = NTYPES.index(s), NTYPES.index(d)
            agg = jnp.zeros((num_nodes[d], out_dim), jnp.float32).at[dst_idx].add(h[s][src_idx])
            o = agg @ layer["w_rel"][di, si].T + layer["b_rel"][di, si, 0]
            o = o + h[d] @ layer["w_root"][di, si].T
            new_h[d] = new_h[d] + o
        h = {t: jnp.maximum(new_h[t], 0.0) for t in NTYPES}
    out = {}
    for t in ("H", "C"):
        p = params["pred"][t]
        out[t] = h[t] @ p["w"].T + p["b"]
    return out


# --------------------------------------------------------------------------
if __name__ == "__main__":
    key = jax.random.PRNGKey(0)

    in_dim_dict = {"H": 5, "C": 7, "Others": 3}
    hidden_dim, out_dim, num_gnn_layers = 32, 16, 2
    num_nodes = {"H": 10, "C": 6, "Others": 4}
    n_pad = 16
    in_max = 8
    edges_per_rel = 12

    # Node features.
    x_dict = {}
    for t in NTYPES:
        key, k = jax.random.split(key)
        x_dict[t] = jax.random.normal(k, (num_nodes[t], in_dim_dict[t]), jnp.float32)

    # Edge indices for all 9 relations.
    edge_index_dict = {}
    for s in NTYPES:
        for d in NTYPES:
            key, k1, k2 = jax.random.split(key, 3)
            src = jax.random.randint(k1, (edges_per_rel,), 0, num_nodes[s])
            dst = jax.random.randint(k2, (edges_per_rel,), 0, num_nodes[d])
            edge_index_dict[(s, "bond", d)] = (src, dst)

    key, pk = jax.random.split(key)
    params = init_params(pk, in_dim_dict, hidden_dim, out_dim, num_gnn_layers)

    fused_inputs = build_fused_inputs(x_dict, edge_index_dict, params,
                                      num_nodes, n_pad, in_max, out_dim)
    out = hetero_gnn_forward_fused(fused_inputs, num_nodes, n_pad)
    jax.block_until_ready(out["H"])
    jax.block_until_ready(out["C"])

    ref = reference_forward(x_dict, edge_index_dict, params, num_nodes, out_dim)
    assert out["Others"] is None
    for t in ("H", "C"):
        assert out[t].shape == (num_nodes[t], 1)
        assert jnp.allclose(out[t], ref[t], atol=2e-4, rtol=2e-4), f"mismatch for {t}"

    print("KERNEL_OK")
</pallas_src>

<mosaic_0001>
module attributes {stable_mosaic.version = 11 : i64} {
  func.func @_fused_hetero_gnn_kernel(%arg0: memref<48x24xf32, #tpu.memory_space<vmem>>, %arg1: memref<48x48xf32, #tpu.memory_space<vmem>>, %arg2: memref<24x96xf32, #tpu.memory_space<vmem>>, %arg3: memref<1x96xf32, #tpu.memory_space<vmem>>, %arg4: memref<96x48xf32, #tpu.memory_space<vmem>>, %arg5: memref<1x48xf32, #tpu.memory_space<vmem>>, %arg6: memref<48x48xbf16, #tpu.memory_space<vmem>>, %arg7: memref<2x48x48xf32, #tpu.memory_space<vmem>>, %arg8: memref<2x48x48xf32, #tpu.memory_space<vmem>>, %arg9: memref<2x1x48xf32, #tpu.memory_space<vmem>>, %arg10: memref<48x8xf32, #tpu.memory_space<vmem>>, %arg11: memref<1x8xf32, #tpu.memory_space<vmem>>, %arg12: memref<48x8xf32, #tpu.memory_space<vmem>>, %arg13: memref<48x48xf32, #tpu.memory_space<vmem>>) attributes {dimension_semantics = [], scalar_prefetch = 0 : i64, scratch_operands = 1 : i64, tpu.core_type = #tpu.core_type<tc>} {
    %c0 = arith.constant 0 : index
    %c0_0 = arith.constant 0 : index
    %0 = vector.load %arg0[%c0, %c0_0] : memref<48x24xf32, #tpu.memory_space<vmem>>, vector<48x24xf32>
    %c0_1 = arith.constant 0 : index
    %c0_2 = arith.constant 0 : index
    %1 = vector.load %arg2[%c0_1, %c0_2] : memref<24x96xf32, #tpu.memory_space<vmem>>, vector<24x96xf32>
    %cst = arith.constant dense<0.000000e+00> : vector<48x96xf32>
    %2 = tpu.matmul %0, %1, %cst {dimension_numbers = #tpu.dot_dimension_numbers<[1], [0], [0], [1], [0, 0, 1, 1], [], []>} : vector<48x24xf32>, vector<24x96xf32>, vector<48x96xf32> -> vector<48x96xf32>
    %c0_3 = arith.constant 0 : index
    %c0_4 = arith.constant 0 : index
    %3 = vector.load %arg3[%c0_3, %c0_4] : memref<1x96xf32, #tpu.memory_space<vmem>>, vector<1x96xf32>
    %4 = vector.broadcast %3 : vector<1x96xf32> to vector<48x96xf32>
    %5 = arith.addf %2, %4 : vector<48x96xf32>
    %cst_5 = arith.constant 0.000000e+00 : f32
    %6 = vector.broadcast %cst_5 : f32 to vector<48x96xf32>
    %7 = arith.maximumf %5, %6 : vector<48x96xf32>
    %c0_6 = arith.constant 0 : index
    %c0_7 = arith.constant 0 : index
    %8 = vector.load %arg4[%c0_6, %c0_7] : memref<96x48xf32, #tpu.memory_space<vmem>>, vector<96x48xf32>
    %cst_8 = arith.constant dense<0.000000e+00> : vector<48x48xf32>
    %9 = tpu.matmul %7, %8, %cst_8 {dimension_numbers = #tpu.dot_dimension_numbers<[1], [0], [0], [1], [0, 0, 1, 1], [], []>} : vector<48x96xf32>, vector<96x48xf32>, vector<48x48xf32> -> vector<48x48xf32>
    %c0_9 = arith.constant 0 : index
    %c0_10 = arith.constant 0 : index
    %10 = vector.load %arg5[%c0_9, %c0_10] : memref<1x48xf32, #tpu.memory_space<vmem>>, vector<1x48xf32>
    %11 = vector.broadcast %10 : vector<1x48xf32> to vector<48x48xf32>
    %12 = arith.addf %9, %11 : vector<48x48xf32>
    %cst_11 = arith.constant 0.000000e+00 : f32
    %13 = vector.broadcast %cst_11 : f32 to vector<48x48xf32>
    %14 = arith.maximumf %12, %13 : vector<48x48xf32>
    %c0_12 = arith.constant 0 : index
    %c0_13 = arith.constant 0 : index
    %15 = vector.load %arg1[%c0_12, %c0_13] : memref<48x48xf32, #tpu.memory_space<vmem>>, vector<48x48xf32>
    %16 = arith.mulf %14, %15 : vector<48x48xf32>
    %c0_14 = arith.constant 0 : index
    %c0_15 = arith.constant 0 : index
    %17 = vector.load %arg13[%c0_14, %c0_15] : memref<48x48xf32, #tpu.memory_space<vmem>>, vector<48x48xf32>
    tpu.vector_store %arg13[%c0_14, %c0_15], %16 {strides = array<i32>} : memref<48x48xf32, #tpu.memory_space<vmem>>, vector<48x48xf32>,
    %c0_16 = arith.constant 0 : index
    %c0_17 = arith.constant 0 : index
    %18 = vector.load %arg6[%c0_16, %c0_17] : memref<48x48xbf16, #tpu.memory_space<vmem>>, vector<48x48xbf16>
    %19 = arith.extf %18 : vector<48x48xbf16> to vector<48x48xf32>
    %c0_18 = arith.constant 0 : index
    %c0_19 = arith.constant 0 : index
    %20 = vector.load %arg13[%c0_18, %c0_19] : memref<48x48xf32, #tpu.memory_space<vmem>>, vector<48x48xf32>
    %c0_20 = arith.constant 0 : index
    %c0_21 = arith.constant 0 : index
    %c0_22 = arith.constant 0 : index
    %21 = vector.load %arg7[%c0_20, %c0_21, %c0_22] : memref<2x48x48xf32, #tpu.memory_space<vmem>>, vector<1x48x48xf32>
    %22 = vector.shape_cast %21 : vector<1x48x48xf32> to vector<48x48xf32>
    %cst_23 = arith.constant dense<0.000000e+00> : vector<48x48xf32>
    %23 = tpu.matmul %20, %22, %cst_23 {dimension_numbers = #tpu.dot_dimension_numbers<[1], [0], [0], [1], [0, 0, 1, 1], [], []>} : vector<48x48xf32>, vector<48x48xf32>, vector<48x48xf32> -> vector<48x48xf32>
    %c0_24 = arith.constant 0 : index
    %c0_25 = arith.constant 0 : index
    %c0_26 = arith.constant 0 : index
    %24 = vector.load %arg8[%c0_24, %c0_25, %c0_26] : memref<2x48x48xf32, #tpu.memory_space<vmem>>, vector<1x48x48xf32>
    %25 = vector.shape_cast %24 : vector<1x48x48xf32> to vector<48x48xf32>
    %cst_27 = arith.constant dense<0.000000e+00> : vector<48x48xf32>
    %26 = tpu.matmul %20, %25, %cst_27 {dimension_numbers = #tpu.dot_dimension_numbers<[1], [0], [0], [1], [0, 0, 1, 1], [], []>} : vector<48x48xf32>, vector<48x48xf32>, vector<48x48xf32> -> vector<48x48xf32>
    %cst_28 = arith.constant dense<0.000000e+00> : vector<48x48xf32>
    %27 = tpu.matmul %19, %23, %cst_28 {dimension_numbers = #tpu.dot_dimension_numbers<[1], [0], [0], [1], [0, 0, 1, 1], [], []>} : vector<48x48xf32>, vector<48x48xf32>, vector<48x48xf32> -> vector<48x48xf32>
    %28 = arith.addf %27, %26 : vector<48x48xf32>
    %c0_29 = arith.constant 0 : index
    %c0_30 = arith.constant 0 : index
    %c0_31 = arith.constant 0 : index
    %29 = vector.load %arg9[%c0_29, %c0_30, %c0_31] : memref<2x1x48xf32, #tpu.memory_space<vmem>>, vector<1x1x48xf32>
    %30 = vector.shape_cast %29 : vector<1x1x48xf32> to vector<1x48xf32>
    %31 = vector.broadcast %30 : vector<1x48xf32> to vector<48x48xf32>
    %32 = arith.addf %28, %31 : vector<48x48xf32>
    %cst_32 = arith.constant 0.000000e+00 : f32
    %33 = vector.broadcast %cst_32 : f32 to vector<48x48xf32>
    %34 = arith.maximumf %32, %33 : vector<48x48xf32>
    %c0_33 = arith.constant 0 : index
    %c0_34 = arith.constant 0 : index
    %35 = vector.load %arg1[%c0_33, %c0_34] : memref<48x48xf32, #tpu.memory_space<vmem>>, vector<48x48xf32>
    %36 = arith.mulf %34, %35 : vector<48x48xf32>
    %c0_35 = arith.constant 0 : index
    %c0_36 = arith.constant 0 : index
    %37 = vector.load %arg13[%c0_35, %c0_36] : memref<48x48xf32, #tpu.memory_space<vmem>>, vector<48x48xf32>
    tpu.vector_store %arg13[%c0_35, %c0_36], %36 {strides = array<i32>} : memref<48x48xf32, #tpu.memory_space<vmem>>, vector<48x48xf32>,
    %c0_37 = arith.constant 0 : index
    %c0_38 = arith.constant 0 : index
    %38 = vector.load %arg13[%c0_37, %c0_38] : memref<48x48xf32, #tpu.memory_space<vmem>>, vector<48x48xf32>
    %c1 = arith.constant 1 : index
    %c0_39 = arith.constant 0 : index
    %c0_40 = arith.constant 0 : index
    %39 = vector.load %arg7[%c1, %c0_39, %c0_40] : memref<2x48x48xf32, #tpu.memory_space<vmem>>, vector<1x48x48xf32>
    %40 = vector.shape_cast %39 : vector<1x48x48xf32> to vector<48x48xf32>
    %cst_41 = arith.constant dense<0.000000e+00> : vector<48x48xf32>
    %41 = tpu.matmul %38, %40, %cst_41 {dimension_numbers = #tpu.dot_dimension_numbers<[1], [0], [0], [1], [0, 0, 1, 1], [], []>} : vector<48x48xf32>, vector<48x48xf32>, vector<48x48xf32> -> vector<48x48xf32>
    %c1_42 = arith.constant 1 : index
    %c0_43 = arith.constant 0 : index
    %c0_44 = arith.constant 0 : index
    %42 = vector.load %arg8[%c1_42, %c0_43, %c0_44] : memref<2x48x48xf32, #tpu.memory_space<vmem>>, vector<1x48x48xf32>
    %43 = vector.shape_cast %42 : vector<1x48x48xf32> to vector<48x48xf32>
    %cst_45 = arith.constant dense<0.000000e+00> : vector<48x48xf32>
    %44 = tpu.matmul %38, %43, %cst_45 {dimension_numbers = #tpu.dot_dimension_numbers<[1], [0], [0], [1], [0, 0, 1, 1], [], []>} : vector<48x48xf32>, vector<48x48xf32>, vector<48x48xf32> -> vector<48x48xf32>
    %cst_46 = arith.constant dense<0.000000e+00> : vector<48x48xf32>
    %45 = tpu.matmul %19, %41, %cst_46 {dimension_numbers = #tpu.dot_dimension_numbers<[1], [0], [0], [1], [0, 0, 1, 1], [], []>} : vector<48x48xf32>, vector<48x48xf32>, vector<48x48xf32> -> vector<48x48xf32>
    %46 = arith.addf %45, %44 : vector<48x48xf32>
    %c1_47 = arith.constant 1 : index
    %c0_48 = arith.constant 0 : index
    %c0_49 = arith.constant 0 : index
    %47 = vector.load %arg9[%c1_47, %c0_48, %c0_49] : memref<2x1x48xf32, #tpu.memory_space<vmem>>, vector<1x1x48xf32>
    %48 = vector.shape_cast %47 : vector<1x1x48xf32> to vector<1x48xf32>
    %49 = vector.broadcast %48 : vector<1x48xf32> to vector<48x48xf32>
    %50 = arith.addf %46, %49 : vector<48x48xf32>
    %cst_50 = arith.constant 0.000000e+00 : f32
    %51 = vector.broadcast %cst_50 : f32 to vector<48x48xf32>
    %52 = arith.maximumf %50, %51 : vector<48x48xf32>
    %c0_51 = arith.constant 0 : index
    %c0_52 = arith.constant 0 : index
    %53 = vector.load %arg1[%c0_51, %c0_52] : memref<48x48xf32, #tpu.memory_space<vmem>>, vector<48x48xf32>
    %54 = arith.mulf %52, %53 : vector<48x48xf32>
    %c0_53 = arith.constant 0 : index
    %c0_54 = arith.constant 0 : index
    %55 = vector.load %arg13[%c0_53, %c0_54] : memref<48x48xf32, #tpu.memory_space<vmem>>, vector<48x48xf32>
    tpu.vector_store %arg13[%c0_53, %c0_54], %54 {strides = array<i32>} : memref<48x48xf32, #tpu.memory_space<vmem>>, vector<48x48xf32>,
    %c0_55 = arith.constant 0 : index
    %c0_56 = arith.constant 0 : index
    %56 = vector.load %arg13[%c0_55, %c0_56] : memref<48x48xf32, #tpu.memory_space<vmem>>, vector<48x48xf32>
    %c0_57 = arith.constant 0 : index
    %c0_58 = arith.constant 0 : index
    %57 = vector.load %arg10[%c0_57, %c0_58] : memref<48x8xf32, #tpu.memory_space<vmem>>, vector<48x8xf32>
    %cst_59 = arith.constant dense<0.000000e+00> : vector<48x8xf32>
    %58 = tpu.matmul %56, %57, %cst_59 {dimension_numbers = #tpu.dot_dimension_numbers<[1], [0], [0], [1], [0, 0, 1, 1], [], []>} : vector<48x48xf32>, vector<48x8xf32>, vector<48x8xf32> -> vector<48x8xf32>
    %c0_60 = arith.constant 0 : index
    %c0_61 = arith.constant 0 : index
    %59 = vector.load %arg11[%c0_60, %c0_61] : memref<1x8xf32, #tpu.memory_space<vmem>>, vector<1x8xf32>
    %60 = vector.broadcast %59 : vector<1x8xf32> to vector<48x8xf32>
    %61 = arith.addf %58, %60 : vector<48x8xf32>
    %c0_62 = arith.constant 0 : index
    %c0_63 = arith.constant 0 : index
    %62 = vector.load %arg12[%c0_62, %c0_63] : memref<48x8xf32, #tpu.memory_space<vmem>>, vector<48x8xf32>
    tpu.vector_store %arg12[%c0_62, %c0_63], %61 {strides = array<i32>} : memref<48x8xf32, #tpu.memory_space<vmem>>, vector<48x8xf32>,
    return
  }
}

</mosaic_0001>

<bundles_post_ra>
// kernel: tpu_custom_call.1
= control target key start
LH: loop header
LB: loop body
LE: loop exit
PB: predicated region body
PF: predicated region fallthrough
CT: control target
= control target key end

     0   :  { %17 = vsyncpa [#allocation4], 0  ;;  %s2106_s0 = inlined_call_operand.vmem [shape: f32[48,24], index: 0, kind: input, shape index: {}]   ;;  %s2107_s1 = inlined_call_operand.hbm [shape: f32[48,48], index: 1, kind: input, shape index: {}]   ;;  %s2108_s2 = inlined_call_operand.vmem [shape: f32[24,96], index: 2, kind: input, shape index: {}]   ;;  %s2109_s3 = inlined_call_operand.vmem [shape: f32[1,96], index: 3, kind: input, shape index: {}]   ;;  %s2110_s4 = inlined_call_operand.vmem [shape: f32[96,48], index: 4, kind: input, shape index: {}]   ;;  %s2111_s5 = inlined_call_operand.vmem [shape: f32[1,48], index: 5, kind: input, shape index: {}]   ;;  %s2112_s6 = inlined_call_operand.hbm [shape: bf16[48,48], index: 6, kind: input, shape index: {}]   ;;  %s2113_s7 = inlined_call_operand.vmem [shape: f32[2,48,48], index: 7, kind: input, shape index: {}]   ;;  %s2114_s8 = inlined_call_operand.vmem [shape: f32[2,48,48], index: 8, kind: input, shape index: {}]   ;;  %s2115_s9 = inlined_call_operand.vmem [shape: f32[2,1,48], index: 9, kind: input, shape index: {}]   ;;  %s2116_s10 = inlined_call_operand.vmem [shape: f32[48,8], index: 10, kind: input, shape index: {}]   ;;  %s2117_s11 = inlined_call_operand.vmem [shape: f32[1,8], index: 11, kind: input, shape index: {}]   ;;  %s2118_s12 = inlined_call_operand.vmem [shape: f32[48,8], index: 12, kind: output, shape index: {}]  }
   0x1   :  { %18 = vsyncpa [#allocation6], 0  ;;  %s1699_s21 = smov [#allocation3]  }
   0x2   :  { %s26_s22 = sshll.u32 %s1699_s21, 4  ;;  %s27_s22 = int_to_ptr.vmem [resolvable:$true] %s26_s22 }
   0x3   :  { %s1663_s23 = scalar_lea.vmem %s27_s22, 768  ;;  %p1668_p1 = scmp.lt.s32.totalorder %s27_s22, %s27_s22 }
   0x4   :  { %p1664_p0 = scmp.ne.s32.totalorder %s27_s22, %s1663_s23  ;;  %p1669_p2 = scmp.lt.s32.totalorder %s1663_s23, %s1663_s23 }
   0x6   :  { %p1670_p3 = por %p1669_p2, %p1668_p1 }
   0x8   :  { %p1671_p4 = pnand %p1670_p3, %p1664_p0 }
   0xa   :  { %1674 = shalt.err (!%p1671_p4)
}
   0xb   :  { %s1700_s24 = smov 128   ;;  %s1701_s25 = smov 8  }
   0xc   :  { %32 = dma.hbm_to_vmem [thread:$0]  %s2107_s1, 768, %s27_s22, [#allocation4], %s1700_s24, %s1700_s24, %s1701_s25  }
   0xd   :  { %s1702_s28 = smov [#allocation5]  }
   0xe   :  { %s46_s29 = sshll.u32 %s1702_s28, 4  ;;  %s47_s29 = int_to_ptr.vmem [resolvable:$true] %s46_s29 }
   0xf   :  { %s1683_s30 = scalar_lea.vmem %s47_s29, 384  ;;  %p1688_p6 = scmp.lt.s32.totalorder %s47_s29, %s47_s29 }
  0x10   :  { %p1684_p5 = scmp.ne.s32.totalorder %s47_s29, %s1683_s30  ;;  %p1689_p7 = scmp.lt.s32.totalorder %s1683_s30, %s1683_s30 }
  0x12   :  { %p1690_p8 = por %p1689_p7, %p1688_p6 }
  0x14   :  { %p1691_p9 = pnand %p1690_p8, %p1684_p5 }
  0x16   :  { %1694 = shalt.err (!%p1691_p9)
}
  0x17   :  { %s1703_s13 = smov 64   ;;  %s1704_s14 = smov 4  }
  0x18   :  { %52 = dma.hbm_to_vmem [thread:$0]  %s2112_s6, 384, %s47_s29, [#allocation6], %s1703_s13, %s1703_s13, %s1704_s14  }
  0x19   :  { %1695 = dma.done.wait [#allocation4], 768  }
  0x1a   :  { %1696 = vsyncadd [#allocation4], 4294966528 }
  0x1b   :  { %1697 = dma.done.wait [#allocation6], 384  }
  0x1c   :  { %1698 = vsyncadd [#allocation6], 4294966912  ;;  %vm85_vm0 = vcmask 195584   ;;  %v77_v0 = vld [vmem:[%s2108_s2 + $0x10] sm:$0xff]  ;;  %v76_v1 = vld [vmem:[%s2108_s2 + $0x8] sm:$0xff]  ;;  %vm224_vm1 = vcmask 785408  }
  0x1d   :  { %1454 = vmatprep.subr.mxu0 %v77_v0  ;;  %v69_v2 = vld [vmem:[%s2106_s0] sm:$0xff]  ;;  %v216_v4 = vld [vmem:[%s2110_s4 + $0x58] sm:$0xff]  ;;  %v215_v5 = vld [vmem:[%s2110_s4 + $0x50] sm:$0xff]  ;;  %vm356_vm2 = vcmask 392192   ;;  %vm1244_vm3 = vcmask 64512  }
  0x1e   :  { %1455 = vmatpush3.msra.mxu0 %v77_v0  ;;  %v75_v3 = vld [vmem:[%s2108_s2] sm:$0xff]  ;;  %1460 = vmatprep.mubr.msk.f32.mxu0 %vm85_vm0, %v69_v2  ;;  %v70_v6 = vld [vmem:[%s2106_s0 + $0x8] sm:$0xff]  ;;  %v71_v7 = vld [vmem:[%s2106_s0 + $0x10] sm:$0xff] }
  0x1f   :  { %1456 = vmatprep.subr.mxu0 %v76_v1  ;;  %1469 = vmatprep.subr.mxu1 %v216_v4  ;;  %v214_v8 = vld [vmem:[%s2110_s4 + $0x48] sm:$0xff]  ;;  %v213_v9 = vld [vmem:[%s2110_s4 + $0x40] sm:$0xff]  ;;  %v72_v10 = vld [vmem:[%s2106_s0 + $0x18] sm:$0xff] }
  0x20   :  { %1457 = vmatpush3.msra.mxu0 %v76_v1  ;;  %1470 = vmatpush3.msra.mxu1 %v216_v4  ;;  %v73_v11 = vld [vmem:[%s2106_s0 + $0x20] sm:$0xff]  ;;  %v212_v12 = vld [vmem:[%s2110_s4 + $0x38] sm:$0xff]  ;;  %v211_v13 = vld [vmem:[%s2110_s4 + $0x30] sm:$0xff] }
  0x21   :  { %1458 = vmatprep.subr.mxu0 %v75_v3  ;;  %1471 = vmatprep.subr.mxu1 %v215_v5  ;;  %v74_v14 = vld [vmem:[%s2106_s0 + $0x28] sm:$0xff]  ;;  %v209_v16 = vld [vmem:[%s2110_s4 + $0x20] sm:$0xff]  ;;  %v208_v17 = vld [vmem:[%s2110_s4 + $0x18] sm:$0xff] }
  0x22   :  { %1459 = vmatpush3.msra.mxu0 %v75_v3  ;;  %1472 = vmatpush3.msra.mxu1 %v215_v5  ;;  %v210_v15 = vld [vmem:[%s2110_s4 + $0x28] sm:$0xff]  ;;  %v207_v18 = vld [vmem:[%s2110_s4 + $0x10] sm:$0xff]  ;;  %v205_v20 = vld [vmem:[%s2110_s4] sm:$0xff] }
  0x23   :  { %1461 = vmatmul.mubr.msk.f32.vlgmr.msra.gmra.mxu0 %vm85_vm0, %v70_v6  ;;  %1473 = vmatprep.subr.mxu1 %v214_v8  ;;  %v206_v19 = vld [vmem:[%s2110_s4 + $0x8] sm:$0xff]  ;;  %v1257_v21 = vld [vmem:[%s2109_s3] ss:$0 sm:$0xff]  ;;  %v384_v42 = vld [vmem:[%s2113_s7 + $0x18] sm:$0xff] }
  0x24   :  { %1463 = vmatprep.mubr.msk.f32.mxu0 %vm85_vm0, %v71_v7  ;;  %1474 = vmatpush3.msra.mxu1 %v214_v8  ;;  %v386_v40 = vld [vmem:[%s2113_s7 + $0x28] sm:$0xff]  ;;  %v385_v41 = vld [vmem:[%s2113_s7 + $0x20] sm:$0xff]  ;;  %v383_v43 = vld [vmem:[%s2113_s7 + $0x10] sm:$0xff] }
  0x25   :  { %1475 = vmatprep.subr.mxu1 %v213_v9  ;;  %1502 = vmatprep.subr.mxu0 %v386_v40  ;;  %v382_v44 = vld [vmem:[%s2113_s7 + $0x8] sm:$0xff]  ;;  %v381_v45 = vld [vmem:[%s2113_s7] sm:$0xff]  ;;  %v1878_v50 = vld [vmem:[#allocation3 + $0x8] sm:$0xff] }
  0x26   :  { %1476 = vmatpush3.msra.mxu1 %v213_v9  ;;  %1503 = vmatpush3.msra.mxu0 %v386_v40  ;;  %v505_v46 = vld [vmem:[%s2114_s8 + $0x28] sm:$0xff]  ;;  %v1264_v47 = vld [vmem:[%s2111_s5] ss:$0 sm:$0xff]  ;;  %v1880_v54 = vld [vmem:[#allocation3] sm:$0xff] }
  0x27   :  { %1464 = vmatmul.mubr.msk.f32.gmra.mxu0 %vm85_vm0, %v72_v10  ;;  %1477 = vmatprep.subr.mxu1 %v212_v12  ;;  %v1883_v59 = vld [vmem:[#allocation3 + $0x18] sm:$0xff]  ;;  %v1887_v0 = vld [vmem:[#allocation3 + $0x10] sm:$0xff]  ;;  %v1891_v5 = vld [vmem:[#allocation3 + $0x28] sm:$0xff] }
  0x28   :  { %1466 = vmatprep.mubr.msk.f32.mxu0 %vm85_vm0, %v73_v11  ;;  %1478 = vmatpush3.msra.mxu1 %v212_v12  ;;  %v1895_v10 = vld [vmem:[#allocation3 + $0x20] sm:$0xff]  ;;  %v1295_v40 = vld [vmem:[%s2113_s7 + $0x58] sm:$0xff] }
  0x29   :  { %1479 = vmatprep.subr.mxu1 %v211_v13  ;;  %1504 = vmatprep.subr.mxu0 %v385_v41 }
  0x2a   :  { %1480 = vmatpush3.msra.mxu1 %v211_v13  ;;  %1505 = vmatpush3.msra.mxu0 %v385_v41  ;;  %v1307_v41 = vld [vmem:[%s2114_s8 + $0x58] sm:$0xff] }
  0x2b   :  { %1467 = vmatmul.mubr.msk.f32.gmra.mxu0 %vm85_vm0, %v74_v14  ;;  %1481 = vmatprep.subr.mxu1 %v210_v15 }
  0x2c   :  { %1482 = vmatpush3.msra.mxu1 %v210_v15  ;;  %1506 = vmatprep.subr.mxu0 %v384_v42 }
  0x2d   :  { %1483 = vmatprep.subr.mxu1 %v209_v16  ;;  %1507 = vmatpush3.msra.mxu0 %v384_v42  ;;  %v1294_v42 = vld [vmem:[%s2113_s7 + $0x50] sm:$0xff] }
  0x2e   :  { %1484 = vmatpush3.msra.mxu1 %v209_v16  ;;  %1508 = vmatprep.subr.mxu0 %v383_v43  ;;  %v504_v16 = vld [vmem:[%s2114_s8 + $0x20] sm:$0xff] }
  0x2f   :  { %1485 = vmatprep.subr.mxu1 %v208_v17  ;;  %1509 = vmatpush3.msra.mxu0 %v383_v43  ;;  %v1306_v43 = vld [vmem:[%s2114_s8 + $0x50] sm:$0xff] }
  0x30   :  { %1486 = vmatpush3.msra.mxu1 %v208_v17  ;;  %1510 = vmatprep.subr.mxu0 %v382_v44  ;;  %v503_v17 = vld [vmem:[%s2114_s8 + $0x18] sm:$0xff] }
  0x31   :  { %1487 = vmatprep.subr.mxu1 %v207_v18  ;;  %1511 = vmatpush3.msra.mxu0 %v382_v44  ;;  %v1293_v44 = vld [vmem:[%s2113_s7 + $0x48] sm:$0xff] }
  0x32   :  { %1488 = vmatpush3.msra.mxu1 %v207_v18  ;;  %1512 = vmatprep.subr.mxu0 %v381_v45 }
  0x33   :  { %1489 = vmatprep.subr.mxu1 %v206_v19  ;;  %1513 = vmatpush3.msra.mxu0 %v381_v45  ;;  %v1305_v45 = vld [vmem:[%s2114_s8 + $0x48] sm:$0xff] }
  0x34   :  { %1490 = vmatpush3.msra.mxu1 %v206_v19  ;;  %1523 = vmatprep.subr.mxu0 %v505_v46 }
  0x35   :  { %1491 = vmatprep.subr.mxu1 %v205_v20 }
  0x36   :  { %1492 = vmatpush3.msra.mxu1 %v205_v20  ;;  %v502_v20 = vld [vmem:[%s2114_s8 + $0x10] sm:$0xff] }
  0xe3   :  { %v1462_v22 = vpop.f32.mrf.mxu0 }
  0xe4   :  { %v176_v23 = vadd.f32 %v1462_v22, %v1257_v21 }
  0xe5   :  { %v170_v24 = vpop.f32.mrf.mxu0 }
  0xe6   :  { %v171_v25 = vadd.f32 %v1257_v21, %v170_v24  ;;  %v200_v28 = vmax.f32 %v176_v23, 0.0  ;;  %v500_v24 = vld [vmem:[%s2114_s8] sm:$0xff] }
  0xe7   :  { %v1465_v26 = vpop.f32.mrf.mxu0 }
  0xe8   :  { %v199_v27 = vmax.f32 %v171_v25, 0.0  ;;  %v186_v29 = vadd.f32 %v1465_v26, %v1257_v21  ;;  %v1929_v25 = vld [vmem:[#allocation5] sm:$0xff]  }
  0xe9   :  { %v180_v30 = vpop.f32.mrf.mxu0  ;;  %v1331_v26 = vunpack.c.l.bf16 %v1929_v25 }
  0xea   :  { %v181_v31 = vadd.f32 %v1257_v21, %v180_v30  ;;  %1493 = vmatprep.mubr.msk.f32.mxu1 %vm224_vm1, %v199_v27  ;;  %v202_v34 = vmax.f32 %v186_v29, 0.0 }
  0xeb   :  { %v1468_v32 = vpop.f32.mrf.mxu0  ;;  %1494 = vmatmul.mubr.msk.f32.vlgmr.msra.gmra.mxu1 %vm224_vm1, %v200_v28 }
  0xec   :  { %v201_v33 = vmax.f32 %v181_v31, 0.0  ;;  %v196_v35 = vadd.f32 %v1468_v32, %v1257_v21 }
  0xed   :  { %v190_v36 = vpop.f32.mrf.mxu0 }
  0xee   :  { %v191_v37 = vadd.f32 %v1257_v21, %v190_v36  ;;  %1496 = vmatprep.mubr.msk.f32.mxu1 %vm224_vm1, %v201_v33  ;;  %v204_v39 = vmax.f32 %v196_v35, 0.0  ;;  %v501_v21 = vld [vmem:[%s2114_s8 + $0x8] sm:$0xff]  ;;  %v1939_v36 = vld [vmem:[#allocation5 + $0x10] sm:$0xff]  }
  0xef   :  { %1497 = vmatmul.mubr.msk.f32.gmra.mxu1 %vm224_vm1, %v202_v34  ;;  %v1935_v33 = vld [vmem:[#allocation5 + $0x8] sm:$0xff]   ;;  %v1332_v34 = vunpack.c.h.bf16 %v1929_v25 }
  0xf0   :  { %v203_v38 = vmax.f32 %v191_v37, 0.0  ;;  %v1335_v35 = vunpack.c.l.bf16 %v1935_v33  ;;  %v1336_v37 = vunpack.c.h.bf16 %v1935_v33  ;;  %v1123_v25 = vld [vmem:[%s2116_s10 + $0x28] sm:$0xff]  ;;  %v1121_v33 = vld [vmem:[%s2116_s10 + $0x18] sm:$0xff] }
  0xf2   :  { %1499 = vmatprep.mubr.msk.f32.mxu1 %vm224_vm1, %v203_v38  ;;  %v1339_v38 = vunpack.c.l.bf16 %v1939_v36 }
  0xf3   :  { %1500 = vmatmul.mubr.msk.f32.gmra.mxu1 %vm224_vm1, %v204_v39  ;;  %v1340_v39 = vunpack.c.h.bf16 %v1939_v36  ;;  %v1118_v36 = vld [vmem:[%s2116_s10] sm:$0xff] }
  0xf4   :  { %1556 = vmatprep.mubr.msk.f32.mxu1 %vm356_vm2, %v1331_v26 }
 0x1ab   :  { %v1495_v48 = vpop.f32.mrf.mxu1 }
 0x1ac   :  { %v315_v49 = vadd.f32 %v1495_v48, %v1264_v47  ;;  %v1291_v48 = vld [vmem:[%s2113_s7 + $0x38] sm:$0xff] }
 0x1ad   :  { %v309_v51 = vpop.f32.mrf.mxu1 }
 0x1ae   :  { %v339_v52 = vmax.f32 %v315_v49, 0.0  ;;  %v310_v53 = vadd.f32 %v1264_v47, %v309_v51  ;;  %v1303_v49 = vld [vmem:[%s2114_s8 + $0x38] sm:$0xff]  ;;  %v1290_v51 = vld [vmem:[%s2113_s7 + $0x30] sm:$0xff] }
 0x1af   :  { %v1498_v55 = vpop.f32.mrf.mxu1 }
 0x1b0   :  { %v351_v56 = vmul.f32 %v1878_v50, %v339_v52  ;;  %v338_v57 = vmax.f32 %v310_v53, 0.0  ;;  %v325_v58 = vadd.f32 %v1498_v55, %v1264_v47  ;;  %v1302_v52 = vld [vmem:[%s2114_s8 + $0x30] sm:$0xff] }
 0x1b1   :  { %v319_v60 = vpop.f32.mrf.mxu1 }
 0x1b2   :  { %358 = vst.msk [vmem:[#allocation2 + $0x8] sm:$0xff] %vm356_vm2, %v351_v56  ;;  %v350_v61 = vmul.f32 %v1880_v54, %v338_v57  ;;  %v341_v62 = vmax.f32 %v325_v58, 0.0  ;;  %v320_v63 = vadd.f32 %v1264_v47, %v319_v60  ;;  %v1289_v58 = vld [vmem:[%s2115_s9] ss:$0 sm:$0xff] }
 0x1b3   :  { %v1501_v1 = vpop.f32.mrf.mxu1 }
 0x1b4   :  { %357 = vst.msk [vmem:[#allocation2] sm:$0xff] %vm356_vm2, %v350_v61  ;;  %v353_v2 = vmul.f32 %v1883_v59, %v341_v62  ;;  %v340_v3 = vmax.f32 %v320_v63, 0.0  ;;  %v335_v4 = vadd.f32 %v1501_v1, %v1264_v47 }
 0x1b5   :  { %v329_v6 = vpop.f32.mrf.mxu1 }
 0x1b6   :  { %360 = vst.msk [vmem:[#allocation2 + $0x18] sm:$0xff] %vm356_vm2, %v353_v2  ;;  %v352_v7 = vmul.f32 %v1887_v0, %v340_v3  ;;  %v343_v8 = vmax.f32 %v335_v4, 0.0  ;;  %v330_v9 = vadd.f32 %v1264_v47, %v329_v6  ;;  %v1304_v47 = vld [vmem:[%s2114_s8 + $0x40] sm:$0xff] }
 0x1b8   :  { %359 = vst.msk [vmem:[#allocation2 + $0x10] sm:$0xff] %vm356_vm2, %v352_v7  ;;  %v355_v11 = vmul.f32 %v1891_v5, %v343_v8  ;;  %v342_v12 = vmax.f32 %v330_v9, 0.0 }
 0x1b9   :  { %v376_v15 = vld [vmem:[#allocation2 + $0x8] sm:$0xff] }
 0x1ba   :  { %362 = vst.msk [vmem:[#allocation2 + $0x28] sm:$0xff] %vm356_vm2, %v355_v11  ;;  %v354_v13 = vmul.f32 %v1895_v10, %v342_v12 }
 0x1bb   :  { %v375_v14 = vld [vmem:[#allocation2] sm:$0xff] }
 0x1bc   :  { %361 = vst.msk [vmem:[#allocation2 + $0x20] sm:$0xff] %vm356_vm2, %v354_v13  ;;  %1514 = vmatprep.mubr.msk.f32.mxu0 %vm356_vm2, %v375_v14 }
 0x1bd   :  { %1515 = vmatmul.mubr.msk.f32.vlgmr.msra.gmra.mxu0 %vm356_vm2, %v376_v15  ;;  %v378_v19 = vld [vmem:[#allocation2 + $0x18] sm:$0xff] }
 0x1be   :  { %1524 = vmatpush3.msra.mxu0 %v505_v46  ;;  %v1292_v46 = vld [vmem:[%s2113_s7 + $0x40] sm:$0xff] }
 0x1bf   :  { %1525 = vmatprep.subr.mxu0 %v504_v16  ;;  %v377_v18 = vld [vmem:[#allocation2 + $0x10] sm:$0xff] }
 0x1c0   :  { %1517 = vmatprep.mubr.msk.f32.mxu0 %vm356_vm2, %v377_v18  ;;  %1526 = vmatpush3.msra.mxu0 %v504_v16 }
 0x1c1   :  { %1518 = vmatmul.mubr.msk.f32.gmra.mxu0 %vm356_vm2, %v378_v19  ;;  %1527 = vmatprep.subr.mxu0 %v503_v17  ;;  %v380_v23 = vld [vmem:[#allocation2 + $0x28] sm:$0xff] }
 0x1c2   :  { %1528 = vmatpush3.msra.mxu0 %v503_v17 }
 0x1c3   :  { %1529 = vmatprep.subr.mxu0 %v502_v20  ;;  %v379_v22 = vld [vmem:[#allocation2 + $0x20] sm:$0xff] }
 0x1c4   :  { %1520 = vmatprep.mubr.msk.f32.mxu0 %vm356_vm2, %v379_v22  ;;  %1530 = vmatpush3.msra.mxu0 %v502_v20 }
 0x1c5   :  { %1521 = vmatmul.mubr.msk.f32.gmra.mxu0 %vm356_vm2, %v380_v23  ;;  %1531 = vmatprep.subr.mxu0 %v501_v21 }
 0x1c6   :  { %1532 = vmatpush3.msra.mxu0 %v501_v21  ;;  %1535 = vmatprep.mubr.msk.f32.mxu0 %vm356_vm2, %v375_v14 }
 0x1c7   :  { %1533 = vmatprep.subr.mxu0 %v500_v24 }
 0x1c8   :  { %1534 = vmatpush3.msra.mxu0 %v500_v24 }
 0x1c9   :  { %1536 = vmatmul.mubr.msk.f32.vlgmr.msra.gmra.mxu0 %vm356_vm2, %v376_v15  ;;  %1565 = vmatprep.subr.mxu0 %v1295_v40 }
 0x1ca   :  { %1538 = vmatprep.mubr.msk.f32.mxu0 %vm356_vm2, %v377_v18  ;;  %1566 = vmatpush3.msra.mxu0 %v1295_v40 }
 0x1cb   :  { %1567 = vmatprep.subr.mxu0 %v1294_v42 }
 0x1cc   :  { %1568 = vmatpush3.msra.mxu0 %v1294_v42 }
 0x1cd   :  { %1539 = vmatmul.mubr.msk.f32.gmra.mxu0 %vm356_vm2, %v378_v19  ;;  %1569 = vmatprep.subr.mxu0 %v1293_v44 }
 0x1ce   :  { %1541 = vmatprep.mubr.msk.f32.mxu0 %vm356_vm2, %v379_v22  ;;  %1570 = vmatpush3.msra.mxu0 %v1293_v44 }
 0x1cf   :  { %1571 = vmatprep.subr.mxu0 %v1292_v46 }
 0x1d0   :  { %1572 = vmatpush3.msra.mxu0 %v1292_v46 }
 0x1d1   :  { %1542 = vmatmul.mubr.msk.f32.gmra.mxu0 %vm356_vm2, %v380_v23  ;;  %1573 = vmatprep.subr.mxu0 %v1291_v48 }
 0x1d2   :  { %1574 = vmatpush3.msra.mxu0 %v1291_v48 }
 0x1d3   :  { %1575 = vmatprep.subr.mxu0 %v1290_v51 }
 0x1d4   :  { %1576 = vmatpush3.msra.mxu0 %v1290_v51 }
 0x27d   :  { %v1516_v27 = vpop.f32.mrf.mxu0 }
 0x27f   :  { %v471_v28 = vpop.f32.mrf.mxu0 }
 0x281   :  { %v1519_v29 = vpop.f32.mrf.mxu0 }
 0x283   :  { %v481_v30 = vpop.f32.mrf.mxu0 }
 0x285   :  { %v1522_v31 = vpop.f32.mrf.mxu0 }
 0x286   :  { %1544 = vmatprep.subr.mxu1 %v1522_v31 }
 0x287   :  { %v491_v32 = vpop.f32.mrf.mxu0  ;;  %1545 = vmatpush3.msra.mxu1 %v1522_v31 }
 0x288   :  { %1546 = vmatprep.subr.mxu1 %v491_v32 }
 0x289   :  { %1547 = vmatpush3.msra.mxu1 %v491_v32  ;;  %v1537_v53 = vpop.f32.mrf.mxu0 }
 0x28a   :  { %1548 = vmatprep.subr.mxu1 %v1519_v29 }
 0x28b   :  { %1549 = vmatpush3.msra.mxu1 %v1519_v29  ;;  %v572_v55 = vpop.f32.mrf.mxu0 }
 0x28c   :  { %1550 = vmatprep.subr.mxu1 %v481_v30 }
 0x28d   :  { %1551 = vmatpush3.msra.mxu1 %v481_v30  ;;  %v1540_v56 = vpop.f32.mrf.mxu0 }
 0x28e   :  { %1552 = vmatprep.subr.mxu1 %v1516_v27 }
 0x28f   :  { %1553 = vmatpush3.msra.mxu1 %v1516_v27  ;;  %v582_v61 = vpop.f32.mrf.mxu0 }
 0x290   :  { %1554 = vmatprep.subr.mxu1 %v471_v28 }
 0x291   :  { %1555 = vmatpush3.msra.mxu1 %v471_v28  ;;  %v1543_v7 = vpop.f32.mrf.mxu0 }
 0x292   :  { %1557 = vmatmul.mubr.msk.f32.vlgmr.msra.gmra.mxu1 %vm356_vm2, %v1332_v34  ;;  %1586 = vmatprep.subr.mxu1 %v1307_v41 }
 0x293   :  { %1559 = vmatprep.mubr.msk.f32.mxu1 %vm356_vm2, %v1335_v35  ;;  %1587 = vmatpush3.msra.mxu1 %v1307_v41  ;;  %v592_v19 = vpop.f32.mrf.mxu0 }
 0x294   :  { %1588 = vmatprep.subr.mxu1 %v1306_v43 }
 0x295   :  { %1589 = vmatpush3.msra.mxu1 %v1306_v43 }
 0x296   :  { %1560 = vmatmul.mubr.msk.f32.gmra.mxu1 %vm356_vm2, %v1336_v37  ;;  %1590 = vmatprep.subr.mxu1 %v1305_v45 }
 0x297   :  { %1562 = vmatprep.mubr.msk.f32.mxu1 %vm356_vm2, %v1339_v38  ;;  %1591 = vmatpush3.msra.mxu1 %v1305_v45 }
 0x298   :  { %1592 = vmatprep.subr.mxu1 %v1304_v47 }
 0x299   :  { %1593 = vmatpush3.msra.mxu1 %v1304_v47 }
 0x29a   :  { %1563 = vmatmul.mubr.msk.f32.gmra.mxu1 %vm356_vm2, %v1340_v39  ;;  %1594 = vmatprep.subr.mxu1 %v1303_v49 }
 0x29b   :  { %1595 = vmatpush3.msra.mxu1 %v1303_v49 }
 0x29c   :  { %1596 = vmatprep.subr.mxu1 %v1302_v52 }
 0x29d   :  { %1597 = vmatpush3.msra.mxu1 %v1302_v52 }
 0x29e   :  { %1628 = vmatprep.subr.mxu1 %v1123_v25 }
 0x352   :  { %v1558_v57 = vpop.f32.mrf.mxu1 }
 0x353   :  { %v691_v60 = vadd.f32 %v1558_v57, %v1537_v53 }
 0x354   :  { %v685_v62 = vpop.f32.mrf.mxu1 }
 0x355   :  { %v722_v63 = vadd.f32 %v1289_v58, %v691_v60  ;;  %v686_v1 = vadd.f32 %v685_v62, %v572_v55  ;;  %v1321_v55 = vld [vmem:[%s2115_s9 + $0x1] ss:$0 sm:$0xff] }
 0x356   :  { %v1561_v2 = vpop.f32.mrf.mxu1 }
 0x357   :  { %v728_v3 = vmax.f32 %v722_v63, 0.0  ;;  %v721_v4 = vadd.f32 %v1289_v58, %v686_v1  ;;  %v701_v6 = vadd.f32 %v1561_v2, %v1540_v56 }
 0x358   :  { %v695_v8 = vpop.f32.mrf.mxu1 }
 0x359   :  { %v740_v9 = vmul.f32 %v728_v3, %v1878_v50  ;;  %v727_v11 = vmax.f32 %v721_v4, 0.0  ;;  %v724_v12 = vadd.f32 %v1289_v58, %v701_v6  ;;  %v696_v13 = vadd.f32 %v695_v8, %v582_v61 }
 0x35a   :  { %v1564_v14 = vpop.f32.mrf.mxu1 }
 0x35b   :  { %746 = vst.msk [vmem:[#allocation2 + $0x8] sm:$0xff] %vm356_vm2, %v740_v9  ;;  %v739_v15 = vmul.f32 %v727_v11, %v1880_v54  ;;  %v730_v16 = vmax.f32 %v724_v12, 0.0  ;;  %v723_v17 = vadd.f32 %v1289_v58, %v696_v13  ;;  %v711_v18 = vadd.f32 %v1564_v14, %v1543_v7 }
 0x35c   :  { %v705_v20 = vpop.f32.mrf.mxu1 }
 0x35d   :  { %745 = vst.msk [vmem:[#allocation2] sm:$0xff] %vm356_vm2, %v739_v15  ;;  %v742_v21 = vmul.f32 %v730_v16, %v1883_v59  ;;  %v729_v22 = vmax.f32 %v723_v17, 0.0  ;;  %v726_v23 = vadd.f32 %v1289_v58, %v711_v18  ;;  %v706_v24 = vadd.f32 %v705_v20, %v592_v19 }
 0x35f   :  { %748 = vst.msk [vmem:[#allocation2 + $0x18] sm:$0xff] %vm356_vm2, %v742_v21  ;;  %v741_v27 = vmul.f32 %v729_v22, %v1887_v0  ;;  %v732_v28 = vmax.f32 %v726_v23, 0.0  ;;  %v725_v29 = vadd.f32 %v1289_v58, %v706_v24 }
 0x361   :  { %747 = vst.msk [vmem:[#allocation2 + $0x10] sm:$0xff] %vm356_vm2, %v741_v27  ;;  %v744_v30 = vmul.f32 %v732_v28, %v1891_v5  ;;  %v731_v31 = vmax.f32 %v725_v29, 0.0 }
 0x362   :  { %v752_v41 = vld [vmem:[#allocation2 + $0x8] sm:$0xff] }
 0x363   :  { %750 = vst.msk [vmem:[#allocation2 + $0x28] sm:$0xff] %vm356_vm2, %v744_v30  ;;  %v743_v32 = vmul.f32 %v731_v31, %v1895_v10 }
 0x364   :  { %v751_v40 = vld [vmem:[#allocation2] sm:$0xff] }
 0x365   :  { %749 = vst.msk [vmem:[#allocation2 + $0x20] sm:$0xff] %vm356_vm2, %v743_v32  ;;  %1577 = vmatprep.mubr.msk.f32.mxu0 %vm356_vm2, %v751_v40  ;;  %1598 = vmatprep.mubr.msk.f32.mxu1 %vm356_vm2, %v751_v40 }
 0x366   :  { %1578 = vmatmul.mubr.msk.f32.vlgmr.msra.gmra.mxu0 %vm356_vm2, %v752_v41  ;;  %1599 = vmatmul.mubr.msk.f32.vlgmr.msra.gmra.mxu1 %vm356_vm2, %v752_v41  ;;  %v754_v43 = vld [vmem:[#allocation2 + $0x18] sm:$0xff] }
 0x367   :  { %1629 = vmatpush3.msra.mxu1 %v1123_v25 }
 0x368   :  { %v753_v42 = vld [vmem:[#allocation2 + $0x10] sm:$0xff] }
 0x369   :  { %1580 = vmatprep.mubr.msk.f32.mxu0 %vm356_vm2, %v753_v42  ;;  %1601 = vmatprep.mubr.msk.f32.mxu1 %vm356_vm2, %v753_v42 }
 0x36a   :  { %1581 = vmatmul.mubr.msk.f32.gmra.mxu0 %vm356_vm2, %v754_v43  ;;  %1602 = vmatmul.mubr.msk.f32.gmra.mxu1 %vm356_vm2, %v754_v43  ;;  %v756_v45 = vld [vmem:[#allocation2 + $0x28] sm:$0xff] }
 0x36c   :  { %v755_v44 = vld [vmem:[#allocation2 + $0x20] sm:$0xff] }
 0x36d   :  { %1583 = vmatprep.mubr.msk.f32.mxu0 %vm356_vm2, %v755_v44  ;;  %1604 = vmatprep.mubr.msk.f32.mxu1 %vm356_vm2, %v755_v44 }
 0x36e   :  { %1584 = vmatmul.mubr.msk.f32.gmra.mxu0 %vm356_vm2, %v756_v45  ;;  %1605 = vmatmul.mubr.msk.f32.gmra.mxu1 %vm356_vm2, %v756_v45 }
 0x36f   :  { %1619 = vmatprep.mubr.msk.f32.mxu0 %vm356_vm2, %v1331_v26  ;;  %v1122_v26 = vld [vmem:[%s2116_s10 + $0x20] sm:$0xff] }
 0x370   :  { %1630 = vmatprep.subr.mxu1 %v1122_v26 }
 0x371   :  { %1631 = vmatpush3.msra.mxu1 %v1122_v26 }
 0x372   :  { %1632 = vmatprep.subr.mxu1 %v1121_v33 }
 0x373   :  { %1633 = vmatpush3.msra.mxu1 %v1121_v33 }
 0x426   :  { %v1579_v46 = vpop.f32.mrf.mxu0 }
 0x428   :  { %v848_v47 = vpop.f32.mrf.mxu0 }
 0x42a   :  { %v1582_v48 = vpop.f32.mrf.mxu0 }
 0x42c   :  { %v858_v49 = vpop.f32.mrf.mxu0 }
 0x42e   :  { %v1585_v51 = vpop.f32.mrf.mxu0 }
 0x42f   :  { %1607 = vmatprep.subr.mxu0 %v1585_v51 }
 0x430   :  { %v868_v52 = vpop.f32.mrf.mxu0  ;;  %1608 = vmatpush3.msra.mxu0 %v1585_v51 }
 0x431   :  { %1609 = vmatprep.subr.mxu0 %v868_v52 }
 0x432   :  { %1610 = vmatpush3.msra.mxu0 %v868_v52 }
 0x433   :  { %1611 = vmatprep.subr.mxu0 %v1582_v48 }
 0x434   :  { %1612 = vmatpush3.msra.mxu0 %v1582_v48 }
 0x435   :  { %1613 = vmatprep.subr.mxu0 %v858_v49 }
 0x436   :  { %1614 = vmatpush3.msra.mxu0 %v858_v49 }
 0x437   :  { %1615 = vmatprep.subr.mxu0 %v1579_v46 }
 0x438   :  { %1616 = vmatpush3.msra.mxu0 %v1579_v46 }
 0x439   :  { %1617 = vmatprep.subr.mxu0 %v848_v47 }
 0x43a   :  { %1618 = vmatpush3.msra.mxu0 %v848_v47 }
 0x43b   :  { %1620 = vmatmul.mubr.msk.f32.vlgmr.msra.gmra.mxu0 %vm356_vm2, %v1332_v34  ;;  %v1120_v34 = vld [vmem:[%s2116_s10 + $0x10] sm:$0xff] }
 0x43c   :  { %1622 = vmatprep.mubr.msk.f32.mxu0 %vm356_vm2, %v1335_v35  ;;  %1634 = vmatprep.subr.mxu1 %v1120_v34  ;;  %v1119_v35 = vld [vmem:[%s2116_s10 + $0x8] sm:$0xff] }
 0x43d   :  { %1635 = vmatpush3.msra.mxu1 %v1120_v34 }
 0x43e   :  { %1636 = vmatprep.subr.mxu1 %v1119_v35 }
 0x43f   :  { %1623 = vmatmul.mubr.msk.f32.gmra.mxu0 %vm356_vm2, %v1336_v37  ;;  %1637 = vmatpush3.msra.mxu1 %v1119_v35  ;;  %v1600_v37 = vpop.f32.mrf.mxu1 }
 0x440   :  { %1625 = vmatprep.mubr.msk.f32.mxu0 %vm356_vm2, %v1339_v38  ;;  %1638 = vmatprep.subr.mxu1 %v1118_v36 }
 0x441   :  { %1639 = vmatpush3.msra.mxu1 %v1118_v36  ;;  %v950_v38 = vpop.f32.mrf.mxu1 }
 0x443   :  { %1626 = vmatmul.mubr.msk.f32.gmra.mxu0 %vm356_vm2, %v1340_v39  ;;  %v1603_v39 = vpop.f32.mrf.mxu1 }
 0x445   :  { %v960_v57 = vpop.f32.mrf.mxu1 }
 0x447   :  { %v1606_v3 = vpop.f32.mrf.mxu1 }
 0x449   :  { %v970_v16 = vpop.f32.mrf.mxu1 }
 0x4fb   :  { %v1621_v53 = vpop.f32.mrf.mxu0 }
 0x4fc   :  { %v1051_v56 = vadd.f32 %v1621_v53, %v1600_v37 }
 0x4fd   :  { %v1045_v58 = vpop.f32.mrf.mxu0 }
 0x4fe   :  { %v1083_v60 = vadd.f32 %v1321_v55, %v1051_v56  ;;  %v1046_v61 = vadd.f32 %v1045_v58, %v950_v38 }
 0x4ff   :  { %v1624_v62 = vpop.f32.mrf.mxu0 }
 0x500   :  { %v1089_v63 = vmax.f32 %v1083_v60, 0.0  ;;  %v1082_v1 = vadd.f32 %v1321_v55, %v1046_v61  ;;  %v1061_v2 = vadd.f32 %v1624_v62, %v1603_v39 }
 0x501   :  { %v1055_v4 = vpop.f32.mrf.mxu0 }
 0x502   :  { %v1101_v6 = vmul.f32 %v1089_v63, %v1878_v50  ;;  %v1088_v7 = vmax.f32 %v1082_v1, 0.0  ;;  %v1085_v8 = vadd.f32 %v1321_v55, %v1061_v2  ;;  %v1056_v9 = vadd.f32 %v1055_v4, %v960_v57 }
 0x503   :  { %v1627_v11 = vpop.f32.mrf.mxu0 }
 0x504   :  { %1107 = vst.msk [vmem:[#allocation2 + $0x8] sm:$0xff] %vm356_vm2, %v1101_v6  ;;  %v1100_v12 = vmul.f32 %v1088_v7, %v1880_v54  ;;  %v1091_v13 = vmax.f32 %v1085_v8, 0.0  ;;  %v1084_v14 = vadd.f32 %v1321_v55, %v1056_v9  ;;  %v1071_v15 = vadd.f32 %v1627_v11, %v1606_v3 }
 0x505   :  { %v1065_v17 = vpop.f32.mrf.mxu0 }
 0x506   :  { %1106 = vst.msk [vmem:[#allocation2] sm:$0xff] %vm356_vm2, %v1100_v12  ;;  %v1103_v18 = vmul.f32 %v1091_v13, %v1883_v59  ;;  %v1090_v19 = vmax.f32 %v1084_v14, 0.0  ;;  %v1087_v20 = vadd.f32 %v1321_v55, %v1071_v15  ;;  %v1066_v50 = vadd.f32 %v1065_v17, %v970_v16 }
 0x508   :  { %1109 = vst.msk [vmem:[#allocation2 + $0x18] sm:$0xff] %vm356_vm2, %v1103_v18  ;;  %v1102_v21 = vmul.f32 %v1090_v19, %v1887_v0  ;;  %v1093_v22 = vmax.f32 %v1087_v20, 0.0  ;;  %v1086_v23 = vadd.f32 %v1321_v55, %v1066_v50 }
 0x50a   :  { %1108 = vst.msk [vmem:[#allocation2 + $0x10] sm:$0xff] %vm356_vm2, %v1102_v21  ;;  %v1105_v54 = vmul.f32 %v1093_v22, %v1891_v5  ;;  %v1092_v24 = vmax.f32 %v1086_v23, 0.0 }
 0x50b   :  { %v1113_v59 = vld [vmem:[#allocation2 + $0x8] sm:$0xff] }
 0x50c   :  { %1111 = vst.msk [vmem:[#allocation2 + $0x28] sm:$0xff] %vm356_vm2, %v1105_v54  ;;  %v1104_v27 = vmul.f32 %v1092_v24, %v1895_v10  ;;  %v1322_v10 = vld [vmem:[%s2117_s11] ss:$0 sm:$0xff] }
 0x50d   :  { %v1112_v28 = vld [vmem:[#allocation2] sm:$0xff] }
 0x50e   :  { %1110 = vst.msk [vmem:[#allocation2 + $0x20] sm:$0xff] %vm356_vm2, %v1104_v27  ;;  %1640 = vmatprep.mubr.msk.f32.mxu1 %vm356_vm2, %v1112_v28 }
 0x50f   :  { %1641 = vmatmul.mubr.msk.f32.vlgmr.msra.gmra.mxu1 %vm356_vm2, %v1113_v59  ;;  %v1115_v29 = vld [vmem:[#allocation2 + $0x18] sm:$0xff] }
 0x511   :  { %v1114_v0 = vld [vmem:[#allocation2 + $0x10] sm:$0xff] }
 0x512   :  { %1643 = vmatprep.mubr.msk.f32.mxu1 %vm356_vm2, %v1114_v0 }
 0x513   :  { %1644 = vmatmul.mubr.msk.f32.gmra.mxu1 %vm356_vm2, %v1115_v29  ;;  %v1117_v30 = vld [vmem:[#allocation2 + $0x28] sm:$0xff] }
 0x515   :  { %v1116_v5 = vld [vmem:[#allocation2 + $0x20] sm:$0xff] }
 0x516   :  { %1646 = vmatprep.mubr.msk.f32.mxu1 %vm356_vm2, %v1116_v5 }
 0x517   :  { %1647 = vmatmul.mubr.msk.f32.gmra.mxu1 %vm356_vm2, %v1117_v30 }
 0x5cf   :  { %v1642_v31 = vpop.f32.mrf.mxu1 }
 0x5d0   :  { %v1221_v32 = vadd.f32 %v1642_v31, %v1322_v10 }
 0x5d1   :  { %v1215_v40 = vpop.f32.mrf.mxu1 }
 0x5d2   :  { %1246 = vst.msk [vmem:[%s2118_s12 + $0x8] sm:$0xff] %vm1244_vm3, %v1221_v32  ;;  %v1216_v41 = vadd.f32 %v1322_v10, %v1215_v40 }
 0x5d3   :  { %v1645_v42 = vpop.f32.mrf.mxu1 }
 0x5d4   :  { %1245 = vst.msk [vmem:[%s2118_s12] sm:$0xff] %vm1244_vm3, %v1216_v41  ;;  %v1231_v43 = vadd.f32 %v1645_v42, %v1322_v10 }
 0x5d5   :  { %v1225_v44 = vpop.f32.mrf.mxu1 }
 0x5d6   :  { %1248 = vst.msk [vmem:[%s2118_s12 + $0x18] sm:$0xff] %vm1244_vm3, %v1231_v43  ;;  %v1226_v45 = vadd.f32 %v1322_v10, %v1225_v44 }
 0x5d7   :  { %v1648_v46 = vpop.f32.mrf.mxu1 }
 0x5d8   :  { %1247 = vst.msk [vmem:[%s2118_s12 + $0x10] sm:$0xff] %vm1244_vm3, %v1226_v45  ;;  %v1241_v47 = vadd.f32 %v1648_v46, %v1322_v10 }
 0x5d9   :  { %v1235_v48 = vpop.f32.mrf.mxu1 }
 0x5da   :  { %1250 = vst.msk [vmem:[%s2118_s12 + $0x28] sm:$0xff] %vm1244_vm3, %v1241_v47  ;;  %v1236_v49 = vadd.f32 %v1322_v10, %v1235_v48 }
 0x5dc   :  { %1249 = vst.msk [vmem:[%s2118_s12 + $0x20] sm:$0xff] %vm1244_vm3, %v1236_v49 }
 0x5dd   :  { %1255 = vsyncpa [#allocation4], 1 }
 0x5de   :  { %1256 = vsyncpa [#allocation6], 1 }

</bundles_post_ra>
